<compile_context>
chip_gen: v6e
topology: v6e:2x2x1
jax: 0.10.0
libtpu: 0.0.40
codegen_flags: <defaults>
</compile_context>

<pallas_src>
import functools

import jax
import jax.numpy as jnp
from jax.experimental import pallas as pl
from jax.experimental.pallas import tpu as pltpu


def _erf(x):
    # Abramowitz & Stegun 7.1.26 rational approximation, |abs err| < 1.5e-7.
    # Uses only exp / mul / add / div / where, all safely lowered by Mosaic.
    a1, a2, a3, a4, a5 = 0.254829592, -0.284496736, 1.421413741, -1.453152027, 1.061405429
    pp = 0.3275911
    ax = jnp.where(x >= 0.0, x, -x)
    t = 1.0 / (1.0 + pp * ax)
    poly = ((((a5 * t + a4) * t + a3) * t + a2) * t + a1) * t
    y = 1.0 - poly * jnp.exp(-ax * ax)
    return jnp.where(x >= 0.0, y, -y)


# ----------------------------------------------------------------------------
# Fused kernel (one grid step per batch element):
#   AvgPool + 1x1 conv (sr) + LayerNorm + GELU + MHA + output projection
# ----------------------------------------------------------------------------
def _fused_cross_attention_kernel(
    y_ref, x_ref, pmat_ref, wsrt_ref, bsr_ref, gamma_ref, beta_ref,
    wqt_ref, wkvt_ref, wprojt_ref, bproj_ref, vmask_ref, onesblk_ref,
    out_ref, *, C1, num_heads):
    f32 = jnp.float32
    H = num_heads

    y_b = y_ref[...]                                                   # (N2, C2)
    x_b = x_ref[...]                                                   # (N1, C1)

    # ---- AvgPool2d(pool, pool) as ONE dense matmul (K = N2, good MXU fill).
    pooled = jnp.dot(pmat_ref[...], y_b, preferred_element_type=f32)   # (M, C2)

    # ---- 1x1 conv (sr) + LayerNorm(eps=1e-5) + exact (erf) GELU, all in f32.
    z = jnp.dot(pooled, wsrt_ref[...], preferred_element_type=f32) + bsr_ref[...]
    mean = jnp.mean(z, axis=-1, keepdims=True)
    var = jnp.mean((z - mean) ** 2, axis=-1, keepdims=True)
    zn = (z - mean) * jax.lax.rsqrt(var + 1e-5) * gamma_ref[...] + beta_ref[...]
    x_kv = 0.5 * zn * (1.0 + _erf(zn * 0.7071067811865476))            # (M, C2)

    # ---- Full-width projections (one matmul each; heads stay packed on lanes).
    q = jnp.dot(x_b, wqt_ref[...], preferred_element_type=f32)         # (N1, C1), scale folded
    kv = jnp.dot(x_kv, wkvt_ref[...], preferred_element_type=f32)      # (M, 2*C1)
    k = kv[:, :C1]                                                     # (M, C1)
    v = kv[:, C1:]                                                     # (M, C1)

    # ---- Heads packed along lanes: block-diagonal K/V via tiling + mask.
    # vmask[j, c] = 1 iff (j // M) == (c // head_dim); keeps head h's rows
    # paired only with head h's channels, so one matmul does all heads.
    vmask = vmask_ref[...]                                             # (H*M, C1)
    k_blk = jnp.concatenate([k] * H, axis=0) * vmask                   # (H*M, C1)
    v_blk = jnp.concatenate([v] * H, axis=0) * vmask                   # (H*M, C1)

    # scores: contraction over channels of q with the block-diagonal K rows.
    s = jnp.einsum('nc,jc->nj', q, k_blk, preferred_element_type=f32)  # (N1, H*M)

    # Per-head softmax over M. Subtracting the global row max is exact
    # (softmax is shift-invariant within each head segment) and keeps all
    # elementwise work on lane-dense (N1, H*M) vregs.
    s = s - jnp.max(s, axis=-1, keepdims=True)
    e = jnp.exp(s)
    # ones_blk[j', j] = 1 iff same head segment -> per-head sums, pre-broadcast.
    denom = jnp.dot(e, onesblk_ref[...], preferred_element_type=f32)   # (N1, H*M)
    p_attn = e / denom

    # attention * V and output projection, both full-width.
    o = jnp.dot(p_attn, v_blk, preferred_element_type=f32)             # (N1, C1)
    out_ref[...] = (jnp.dot(o, wprojt_ref[...], preferred_element_type=f32)
                    + bproj_ref[...])                                  # (N1, C1)


# ----------------------------------------------------------------------------
# Wrapper: weight re-layout + static masks (tiny, outside the kernel) + pallas_call
# ----------------------------------------------------------------------------
def cross_attention_forward(x, y, H2, W2, params, *, num_heads, pool_ratio):
    B, N1, C1 = x.shape
    _, N2, C2 = y.shape
    assert N2 == H2 * W2
    assert pool_ratio >= 1 and H2 % pool_ratio == 0 and W2 % pool_ratio == 0
    H = num_heads
    hd = C1 // H
    scale = hd ** (-0.5)
    p = pool_ratio
    Hp, Wp = H2 // p, W2 // p
    M = Hp * Wp
    f32 = jnp.float32

    # Dense AvgPool matrix (M, N2): entry 1/p^2 where token n falls in cell m.
    m_idx = jnp.arange(M)
    n_idx = jnp.arange(N2)
    h_in, w_in = n_idx // W2, n_idx % W2
    hp_out, wp_out = m_idx // Wp, m_idx % Wp
    pmat = (((h_in[None, :] // p) == hp_out[:, None]) &
            ((w_in[None, :] // p) == wp_out[:, None])).astype(f32) / float(p * p)

    # Block-diagonal head masks (heads packed along lanes inside the kernel).
    j_idx = jnp.arange(H * M)
    c_idx = jnp.arange(C1)
    vmask = (j_idx[:, None] // M == c_idx[None, :] // hd).astype(f32)     # (H*M, C1)
    ones_blk = (j_idx[:, None] // M == j_idx[None, :] // M).astype(f32)   # (H*M, H*M)

    # Full-width weight layouts; attention scale folded into Wq at trace time.
    wqt = (params["Wq"] * scale).T        # (C1, C1)
    wkvt = params["Wkv"].T                # (C2, 2*C1)
    wprojt = params["Wproj"].T            # (C1, C1)
    wsrt = params["Wsr"].T                # (C2, C2)
    bsr = params["bsr"].reshape(1, C2)
    gamma = params["ln_gamma"].reshape(1, C2)
    beta = params["ln_beta"].reshape(1, C2)
    bproj = params["bproj"].reshape(1, C1)

    kernel = functools.partial(_fused_cross_attention_kernel, C1=C1, num_heads=H)

    def batch_spec(shape):
        return pl.BlockSpec((None,) + shape, lambda b: (b,) + (0,) * len(shape))

    def const_spec(shape):
        return pl.BlockSpec(shape, lambda b: (0,) * len(shape))

    return pl.pallas_call(
        kernel,
        out_shape=jax.ShapeDtypeStruct((B, N1, C1), f32),
        grid=(B,),
        in_specs=[
            batch_spec((N2, C2)),          # y
            batch_spec((N1, C1)),          # x
            const_spec((M, N2)),           # pooling matrix
            const_spec((C2, C2)),          # Wsr^T
            const_spec((1, C2)),           # bsr
            const_spec((1, C2)),           # ln gamma
            const_spec((1, C2)),           # ln beta
            const_spec((C1, C1)),          # (scale*Wq)^T
            const_spec((C2, 2 * C1)),      # Wkv^T
            const_spec((C1, C1)),          # Wproj^T
            const_spec((1, C1)),           # bproj
            const_spec((H * M, C1)),       # head block-diag mask for K/V
            const_spec((H * M, H * M)),    # block-of-ones (per-head softmax sums)
        ],
        out_specs=batch_spec((N1, C1)),
        compiler_params=pltpu.CompilerParams(
            # Batch elements are independent -> both TensorCores on v7x.
            dimension_semantics=("parallel",)),
    )(y, x, pmat, wsrt, bsr, gamma, beta, wqt, wkvt, wprojt, bproj, vmask, ones_blk)


# ----------------------------------------------------------------------------
# Pure-JAX reference (mirrors the PyTorch forward) for correctness checking
# ----------------------------------------------------------------------------
def cross_attention_reference(x, y, H2, W2, params, *, num_heads, pool_ratio):
    B, N1, C1 = x.shape
    _, N2, C2 = y.shape
    hd = C1 // num_heads
    scale = hd ** (-0.5)

    y_img = jnp.transpose(y, (0, 2, 1)).reshape(B, C2, H2, W2)
    Hp, Wp = H2 // pool_ratio, W2 // pool_ratio
    pooled = y_img.reshape(B, C2, Hp, pool_ratio, Wp, pool_ratio).mean((3, 5))
    x_ = jnp.einsum("oi,bihw->bohw", params["Wsr"], pooled) \
        + params["bsr"][None, :, None, None]
    x_ = x_.reshape(B, C2, -1).transpose(0, 2, 1)                   # (B, M, C2)
    mean = x_.mean(-1, keepdims=True)
    var = ((x_ - mean) ** 2).mean(-1, keepdims=True)
    x_ = (x_ - mean) / jnp.sqrt(var + 1e-5)
    x_ = x_ * params["ln_gamma"] + params["ln_beta"]
    x_ = jax.nn.gelu(x_, approximate=False)

    q = x @ params["Wq"].T
    kv = x_ @ params["Wkv"].T
    M = x_.shape[1]
    q = q.reshape(B, N1, num_heads, hd).transpose(0, 2, 1, 3)
    kv = kv.reshape(B, M, 2, num_heads, hd).transpose(2, 0, 3, 1, 4)
    k, v = kv[0], kv[1]
    attn = (q @ jnp.swapaxes(k, -2, -1)) * scale
    attn = jax.nn.softmax(attn, axis=-1)
    o = (attn @ v).transpose(0, 2, 1, 3).reshape(B, N1, C1)
    return o @ params["Wproj"].T + params["bproj"]


if __name__ == "__main__":
    # Small, deterministic configuration.
    B = 2
    C1 = 32          # dim1
    C2 = 16          # dim2
    num_heads = 4
    N1 = 64          # query tokens
    H2 = W2 = 16     # key/value spatial size -> N2 = 256
    N2 = H2 * W2
    pool_ratio = 4   # pooled tokens M = (16/4)*(16/4) = 16

    key = jax.random.PRNGKey(0)
    ks = jax.random.split(key, 8)
    params = {
        "Wq": 0.02 * jax.random.normal(ks[0], (C1, C1), jnp.float32),       # (out,in), no bias
        "Wkv": 0.02 * jax.random.normal(ks[1], (2 * C1, C2), jnp.float32),  # (out,in), no bias
        "Wproj": 0.02 * jax.random.normal(ks[2], (C1, C1), jnp.float32),
        "bproj": jnp.zeros((C1,), jnp.float32),
        "Wsr": jnp.sqrt(2.0 / C2) * jax.random.normal(ks[3], (C2, C2), jnp.float32),
        "bsr": jnp.zeros((C2,), jnp.float32),
        "ln_gamma": jnp.ones((C2,), jnp.float32),
        "ln_beta": jnp.zeros((C2,), jnp.float32),
    }

    x = jax.random.normal(ks[4], (B, N1, C1), jnp.float32)
    y = jax.random.normal(ks[5], (B, N2, C2), jnp.float32)

    out = cross_attention_forward(x, y, H2, W2, params,
                                  num_heads=num_heads, pool_ratio=pool_ratio)
    out = jax.block_until_ready(out)

    ref = cross_attention_reference(x, y, H2, W2, params,
                                    num_heads=num_heads, pool_ratio=pool_ratio)
    ref = jax.block_until_ready(ref)

    assert out.shape == (B, N1, C1), out.shape
    assert jnp.allclose(out, ref, atol=1e-4, rtol=1e-4), \
        float(jnp.max(jnp.abs(out - ref)))
    print("KERNEL_OK")
</pallas_src>

<mosaic_0001>
module attributes {stable_mosaic.version = 11 : i64} {
  func.func @_fused_cross_attention_kernel(%arg0: i32, %arg1: memref<1x256x16xf32, #tpu.memory_space<vmem>>, %arg2: memref<1x64x32xf32, #tpu.memory_space<vmem>>, %arg3: memref<16x256xf32, #tpu.memory_space<vmem>>, %arg4: memref<16x16xf32, #tpu.memory_space<vmem>>, %arg5: memref<1x16xf32, #tpu.memory_space<vmem>>, %arg6: memref<1x16xf32, #tpu.memory_space<vmem>>, %arg7: memref<1x16xf32, #tpu.memory_space<vmem>>, %arg8: memref<32x32xf32, #tpu.memory_space<vmem>>, %arg9: memref<16x64xf32, #tpu.memory_space<vmem>>, %arg10: memref<32x32xf32, #tpu.memory_space<vmem>>, %arg11: memref<1x32xf32, #tpu.memory_space<vmem>>, %arg12: memref<64x32xf32, #tpu.memory_space<vmem>>, %arg13: memref<64x64xf32, #tpu.memory_space<vmem>>, %arg14: memref<1x64x32xf32, #tpu.memory_space<vmem>>) attributes {dimension_semantics = [#tpu.dimension_semantics<parallel>], iteration_bounds = array<i64: 2>, scalar_prefetch = 0 : i64, scratch_operands = 0 : i64, tpu.core_type = #tpu.core_type<tc>, window_params = [{transform_indices = @transform_0, window_bounds = array<i64: 1, 256, 16>}, {transform_indices = @transform_1, window_bounds = array<i64: 1, 64, 32>}, {pipeline_mode = #tpu.pipeline_mode<synchronous>, transform_indices = @transform_2, window_bounds = array<i64: 16, 256>}, {pipeline_mode = #tpu.pipeline_mode<synchronous>, transform_indices = @transform_3, window_bounds = array<i64: 16, 16>}, {pipeline_mode = #tpu.pipeline_mode<synchronous>, transform_indices = @transform_4, window_bounds = array<i64: 1, 16>}, {pipeline_mode = #tpu.pipeline_mode<synchronous>, transform_indices = @transform_5, window_bounds = array<i64: 1, 16>}, {pipeline_mode = #tpu.pipeline_mode<synchronous>, transform_indices = @transform_6, window_bounds = array<i64: 1, 16>}, {pipeline_mode = #tpu.pipeline_mode<synchronous>, transform_indices = @transform_7, window_bounds = array<i64: 32, 32>}, {pipeline_mode = #tpu.pipeline_mode<synchronous>, transform_indices = @transform_8, window_bounds = array<i64: 16, 64>}, {pipeline_mode = #tpu.pipeline_mode<synchronous>, transform_indices = @transform_9, window_bounds = array<i64: 32, 32>}, {pipeline_mode = #tpu.pipeline_mode<synchronous>, transform_indices = @transform_10, window_bounds = array<i64: 1, 32>}, {pipeline_mode = #tpu.pipeline_mode<synchronous>, transform_indices = @transform_11, window_bounds = array<i64: 64, 32>}, {pipeline_mode = #tpu.pipeline_mode<synchronous>, transform_indices = @transform_12, window_bounds = array<i64: 64, 64>}, {transform_indices = @transform_13, window_bounds = array<i64: 1, 64, 32>}]} {
    %c0 = arith.constant 0 : index
    %c0_0 = arith.constant 0 : index
    %c0_1 = arith.constant 0 : index
    %0 = vector.load %arg1[%c0, %c0_0, %c0_1] : memref<1x256x16xf32, #tpu.memory_space<vmem>>, vector<1x256x16xf32>
    %1 = vector.shape_cast %0 : vector<1x256x16xf32> to vector<256x16xf32>
    %c0_2 = arith.constant 0 : index
    %c0_3 = arith.constant 0 : index
    %c0_4 = arith.constant 0 : index
    %2 = vector.load %arg2[%c0_2, %c0_3, %c0_4] : memref<1x64x32xf32, #tpu.memory_space<vmem>>, vector<1x64x32xf32>
    %3 = vector.shape_cast %2 : vector<1x64x32xf32> to vector<64x32xf32>
    %c0_5 = arith.constant 0 : index
    %c0_6 = arith.constant 0 : index
    %4 = vector.load %arg3[%c0_5, %c0_6] : memref<16x256xf32, #tpu.memory_space<vmem>>, vector<16x256xf32>
    %cst = arith.constant dense<0.000000e+00> : vector<16x16xf32>
    %5 = tpu.matmul %4, %1, %cst {dimension_numbers = #tpu.dot_dimension_numbers<[1], [0], [0], [1], [0, 0, 1, 1], [], []>} : vector<16x256xf32>, vector<256x16xf32>, vector<16x16xf32> -> vector<16x16xf32>
    %c0_7 = arith.constant 0 : index
    %c0_8 = arith.constant 0 : index
    %6 = vector.load %arg4[%c0_7, %c0_8] : memref<16x16xf32, #tpu.memory_space<vmem>>, vector<16x16xf32>
    %cst_9 = arith.constant dense<0.000000e+00> : vector<16x16xf32>
    %7 = tpu.matmul %5, %6, %cst_9 {dimension_numbers = #tpu.dot_dimension_numbers<[1], [0], [0], [1], [0, 0, 1, 1], [], []>} : vector<16x16xf32>, vector<16x16xf32>, vector<16x16xf32> -> vector<16x16xf32>
    %c0_10 = arith.constant 0 : index
    %c0_11 = arith.constant 0 : index
    %8 = vector.load %arg5[%c0_10, %c0_11] : memref<1x16xf32, #tpu.memory_space<vmem>>, vector<1x16xf32>
    %9 = vector.broadcast %8 : vector<1x16xf32> to vector<16x16xf32>
    %10 = arith.addf %7, %9 : vector<16x16xf32>
    %cst_12 = arith.constant dense<0.000000e+00> : vector<16xf32>
    %11 = vector.multi_reduction <add>, %10, %cst_12 [1] : vector<16x16xf32> to vector<16xf32>
    %12 = vector.shape_cast %11 : vector<16xf32> to vector<16x1xf32>
    %cst_13 = arith.constant 1.600000e+01 : f32
    %13 = vector.broadcast %cst_13 : f32 to vector<16x1xf32>
    %14 = arith.divf %12, %13 : vector<16x1xf32>
    %15 = vector.broadcast %14 : vector<16x1xf32> to vector<16x16xf32>
    %16 = arith.subf %10, %15 : vector<16x16xf32>
    %17 = arith.mulf %16, %16 : vector<16x16xf32>
    %cst_14 = arith.constant dense<0.000000e+00> : vector<16xf32>
    %18 = vector.multi_reduction <add>, %17, %cst_14 [1] : vector<16x16xf32> to vector<16xf32>
    %19 = vector.shape_cast %18 : vector<16xf32> to vector<16x1xf32>
    %cst_15 = arith.constant 1.600000e+01 : f32
    %20 = vector.broadcast %cst_15 : f32 to vector<16x1xf32>
    %21 = arith.divf %19, %20 : vector<16x1xf32>
    %22 = vector.broadcast %14 : vector<16x1xf32> to vector<16x16xf32>
    %23 = arith.subf %10, %22 : vector<16x16xf32>
    %cst_16 = arith.constant 9.99999974E-6 : f32
    %24 = vector.broadcast %cst_16 : f32 to vector<16x1xf32>
    %25 = arith.addf %21, %24 : vector<16x1xf32>
    %26 = math.rsqrt %25 : vector<16x1xf32>
    %27 = vector.broadcast %26 : vector<16x1xf32> to vector<16x16xf32>
    %28 = arith.mulf %23, %27 : vector<16x16xf32>
    %c0_17 = arith.constant 0 : index
    %c0_18 = arith.constant 0 : index
    %29 = vector.load %arg6[%c0_17, %c0_18] : memref<1x16xf32, #tpu.memory_space<vmem>>, vector<1x16xf32>
    %30 = vector.broadcast %29 : vector<1x16xf32> to vector<16x16xf32>
    %31 = arith.mulf %28, %30 : vector<16x16xf32>
    %c0_19 = arith.constant 0 : index
    %c0_20 = arith.constant 0 : index
    %32 = vector.load %arg7[%c0_19, %c0_20] : memref<1x16xf32, #tpu.memory_space<vmem>>, vector<1x16xf32>
    %33 = vector.broadcast %32 : vector<1x16xf32> to vector<16x16xf32>
    %34 = arith.addf %31, %33 : vector<16x16xf32>
    %cst_21 = arith.constant 5.000000e-01 : f32
    %35 = vector.broadcast %cst_21 : f32 to vector<16x16xf32>
    %36 = arith.mulf %35, %34 : vector<16x16xf32>
    %cst_22 = arith.constant 0.707106769 : f32
    %37 = vector.broadcast %cst_22 : f32 to vector<16x16xf32>
    %38 = arith.mulf %34, %37 : vector<16x16xf32>
    %cst_23 = arith.constant 0.000000e+00 : f32
    %39 = vector.broadcast %cst_23 : f32 to vector<16x16xf32>
    %40 = arith.cmpf oge, %38, %39 : vector<16x16xf32>
    %cst_24 = arith.constant 0.000000e+00 : f32
    %41 = vector.broadcast %cst_24 : f32 to vector<16x16xf32>
    %42 = arith.subf %41, %38 : vector<16x16xf32>
    %43 = arith.select %40, %38, %42 : vector<16x16xi1>, vector<16x16xf32>
    %cst_25 = arith.constant 0.327591091 : f32
    %44 = vector.broadcast %cst_25 : f32 to vector<16x16xf32>
    %45 = arith.mulf %44, %43 : vector<16x16xf32>
    %cst_26 = arith.constant 1.000000e+00 : f32
    %46 = vector.broadcast %cst_26 : f32 to vector<16x16xf32>
    %47 = arith.addf %46, %45 : vector<16x16xf32>
    %cst_27 = arith.constant 1.000000e+00 : f32
    %48 = vector.broadcast %cst_27 : f32 to vector<16x16xf32>
    %49 = arith.divf %48, %47 : vector<16x16xf32>
    %cst_28 = arith.constant 1.06140542 : f32
    %50 = vector.broadcast %cst_28 : f32 to vector<16x16xf32>
    %51 = arith.mulf %50, %49 : vector<16x16xf32>
    %cst_29 = arith.constant -1.45315206 : f32
    %52 = vector.broadcast %cst_29 : f32 to vector<16x16xf32>
    %53 = arith.addf %51, %52 : vector<16x16xf32>
    %54 = arith.mulf %53, %49 : vector<16x16xf32>
    %cst_30 = arith.constant 1.42141378 : f32
    %55 = vector.broadcast %cst_30 : f32 to vector<16x16xf32>
    %56 = arith.addf %54, %55 : vector<16x16xf32>
    %57 = arith.mulf %56, %49 : vector<16x16xf32>
    %cst_31 = arith.constant -0.284496725 : f32
    %58 = vector.broadcast %cst_31 : f32 to vector<16x16xf32>
    %59 = arith.addf %57, %58 : vector<16x16xf32>
    %60 = arith.mulf %59, %49 : vector<16x16xf32>
    %cst_32 = arith.constant 0.254829586 : f32
    %61 = vector.broadcast %cst_32 : f32 to vector<16x16xf32>
    %62 = arith.addf %60, %61 : vector<16x16xf32>
    %63 = arith.mulf %62, %49 : vector<16x16xf32>
    %cst_33 = arith.constant 0.000000e+00 : f32
    %64 = vector.broadcast %cst_33 : f32 to vector<16x16xf32>
    %65 = arith.subf %64, %43 : vector<16x16xf32>
    %66 = arith.mulf %65, %43 : vector<16x16xf32>
    %67 = math.exp %66 : vector<16x16xf32>
    %68 = arith.mulf %63, %67 : vector<16x16xf32>
    %cst_34 = arith.constant 1.000000e+00 : f32
    %69 = vector.broadcast %cst_34 : f32 to vector<16x16xf32>
    %70 = arith.subf %69, %68 : vector<16x16xf32>
    %cst_35 = arith.constant 0.000000e+00 : f32
    %71 = vector.broadcast %cst_35 : f32 to vector<16x16xf32>
    %72 = arith.cmpf oge, %38, %71 : vector<16x16xf32>
    %cst_36 = arith.constant 0.000000e+00 : f32
    %73 = vector.broadcast %cst_36 : f32 to vector<16x16xf32>
    %74 = arith.subf %73, %70 : vector<16x16xf32>
    %75 = arith.select %72, %70, %74 : vector<16x16xi1>, vector<16x16xf32>
    %cst_37 = arith.constant 1.000000e+00 : f32
    %76 = vector.broadcast %cst_37 : f32 to vector<16x16xf32>
    %77 = arith.addf %76, %75 : vector<16x16xf32>
    %78 = arith.mulf %36, %77 : vector<16x16xf32>
    %c0_38 = arith.constant 0 : index
    %c0_39 = arith.constant 0 : index
    %79 = vector.load %arg8[%c0_38, %c0_39] : memref<32x32xf32, #tpu.memory_space<vmem>>, vector<32x32xf32>
    %cst_40 = arith.constant dense<0.000000e+00> : vector<64x32xf32>
    %80 = tpu.matmul %3, %79, %cst_40 {dimension_numbers = #tpu.dot_dimension_numbers<[1], [0], [0], [1], [0, 0, 1, 1], [], []>} : vector<64x32xf32>, vector<32x32xf32>, vector<64x32xf32> -> vector<64x32xf32>
    %c0_41 = arith.constant 0 : index
    %c0_42 = arith.constant 0 : index
    %81 = vector.load %arg9[%c0_41, %c0_42] : memref<16x64xf32, #tpu.memory_space<vmem>>, vector<16x64xf32>
    %cst_43 = arith.constant dense<0.000000e+00> : vector<16x64xf32>
    %82 = tpu.matmul %78, %81, %cst_43 {dimension_numbers = #tpu.dot_dimension_numbers<[1], [0], [0], [1], [0, 0, 1, 1], [], []>} : vector<16x16xf32>, vector<16x64xf32>, vector<16x64xf32> -> vector<16x64xf32>
    %83 = vector.extract_strided_slice %82 {offsets = [0, 0], sizes = [16, 32], strides = [1, 1]} : vector<16x64xf32> to vector<16x32xf32>
    %84 = vector.extract_strided_slice %82 {offsets = [0, 32], sizes = [16, 32], strides = [1, 1]} : vector<16x64xf32> to vector<16x32xf32>
    %c0_44 = arith.constant 0 : index
    %c0_45 = arith.constant 0 : index
    %85 = vector.load %arg12[%c0_44, %c0_45] : memref<64x32xf32, #tpu.memory_space<vmem>>, vector<64x32xf32>
    %86 = tpu.concatenate %83, %83, %83, %83 in 0 : vector<16x32xf32>, vector<16x32xf32>, vector<16x32xf32>, vector<16x32xf32> -> vector<64x32xf32>
    %87 = arith.mulf %86, %85 : vector<64x32xf32>
    %88 = tpu.concatenate %84, %84, %84, %84 in 0 : vector<16x32xf32>, vector<16x32xf32>, vector<16x32xf32>, vector<16x32xf32> -> vector<64x32xf32>
    %89 = arith.mulf %88, %85 : vector<64x32xf32>
    "tpu.trace_start"() <{level = 10 : i32, message = "nc,jc->nj"}> : () -> ()
    %cst_46 = arith.constant dense<0.000000e+00> : vector<64x64xf32>
    %90 = tpu.matmul %80, %87, %cst_46 {dimension_numbers = #tpu.dot_dimension_numbers<[1], [1], [0], [0], [0, 0, 1, 0], [], []>} : vector<64x32xf32>, vector<64x32xf32>, vector<64x64xf32> -> vector<64x64xf32>
    "tpu.trace_stop"() : () -> ()
    %cst_47 = arith.constant dense<0xFF800000> : vector<64xf32>
    %91 = vector.multi_reduction <maximumf>, %90, %cst_47 [1] : vector<64x64xf32> to vector<64xf32>
    %92 = vector.shape_cast %91 : vector<64xf32> to vector<64x1xf32>
    %93 = vector.broadcast %92 : vector<64x1xf32> to vector<64x64xf32>
    %94 = arith.subf %90, %93 : vector<64x64xf32>
    %95 = math.exp %94 : vector<64x64xf32>
    %c0_48 = arith.constant 0 : index
    %c0_49 = arith.constant 0 : index
    %96 = vector.load %arg13[%c0_48, %c0_49] : memref<64x64xf32, #tpu.memory_space<vmem>>, vector<64x64xf32>
    %cst_50 = arith.constant dense<0.000000e+00> : vector<64x64xf32>
    %97 = tpu.matmul %95, %96, %cst_50 {dimension_numbers = #tpu.dot_dimension_numbers<[1], [0], [0], [1], [0, 0, 1, 1], [], []>} : vector<64x64xf32>, vector<64x64xf32>, vector<64x64xf32> -> vector<64x64xf32>
    %98 = arith.divf %95, %97 : vector<64x64xf32>
    %cst_51 = arith.constant dense<0.000000e+00> : vector<64x32xf32>
    %99 = tpu.matmul %98, %89, %cst_51 {dimension_numbers = #tpu.dot_dimension_numbers<[1], [0], [0], [1], [0, 0, 1, 1], [], []>} : vector<64x64xf32>, vector<64x32xf32>, vector<64x32xf32> -> vector<64x32xf32>
    %c0_52 = arith.constant 0 : index
    %c0_53 = arith.constant 0 : index
    %100 = vector.load %arg10[%c0_52, %c0_53] : memref<32x32xf32, #tpu.memory_space<vmem>>, vector<32x32xf32>
    %cst_54 = arith.constant dense<0.000000e+00> : vector<64x32xf32>
    %101 = tpu.matmul %99, %100, %cst_54 {dimension_numbers = #tpu.dot_dimension_numbers<[1], [0], [0], [1], [0, 0, 1, 1], [], []>} : vector<64x32xf32>, vector<32x32xf32>, vector<64x32xf32> -> vector<64x32xf32>
    %c0_55 = arith.constant 0 : index
    %c0_56 = arith.constant 0 : index
    %102 = vector.load %arg11[%c0_55, %c0_56] : memref<1x32xf32, #tpu.memory_space<vmem>>, vector<1x32xf32>
    %103 = vector.broadcast %102 : vector<1x32xf32> to vector<64x32xf32>
    %104 = arith.addf %101, %103 : vector<64x32xf32>
    %c0_57 = arith.constant 0 : index
    %c0_58 = arith.constant 0 : index
    %c0_59 = arith.constant 0 : index
    %105 = vector.load %arg14[%c0_57, %c0_58, %c0_59] : memref<1x64x32xf32, #tpu.memory_space<vmem>>, vector<1x64x32xf32>
    %106 = vector.shape_cast %105 : vector<1x64x32xf32> to vector<64x32xf32>
    %107 = vector.shape_cast %104 : vector<64x32xf32> to vector<1x64x32xf32>
    tpu.vector_store %arg14[%c0_57, %c0_58, %c0_59], %107 {strides = array<i32>} : memref<1x64x32xf32, #tpu.memory_space<vmem>>, vector<1x64x32xf32>,
    return
  }
  func.func @transform_0(%arg0: i32) -> (i32, i32, i32) {
    %c0_i32 = arith.constant 0 : i32
    %c0_i32_0 = arith.constant 0 : i32
    %c0_i32_1 = arith.constant 0 : i32
    return %arg0, %c0_i32, %c0_i32_0 : i32, i32, i32
  }
  func.func @transform_1(%arg0: i32) -> (i32, i32, i32) {
    %c0_i32 = arith.constant 0 : i32
    %c0_i32_0 = arith.constant 0 : i32
    %c0_i32_1 = arith.constant 0 : i32
    return %arg0, %c0_i32, %c0_i32_0 : i32, i32, i32
  }
  func.func @transform_2(%arg0: i32) -> (i32, i32) {
    %c0_i32 = arith.constant 0 : i32
    %c0_i32_0 = arith.constant 0 : i32
    %c0_i32_1 = arith.constant 0 : i32
    return %c0_i32, %c0_i32_0 : i32, i32
  }
  func.func @transform_3(%arg0: i32) -> (i32, i32) {
    %c0_i32 = arith.constant 0 : i32
    %c0_i32_0 = arith.constant 0 : i32
    %c0_i32_1 = arith.constant 0 : i32
    return %c0_i32, %c0_i32_0 : i32, i32
  }
  func.func @transform_4(%arg0: i32) -> (i32, i32) {
    %c0_i32 = arith.constant 0 : i32
    %c0_i32_0 = arith.constant 0 : i32
    %c0_i32_1 = arith.constant 0 : i32
    return %c0_i32, %c0_i32_0 : i32, i32
  }
  func.func @transform_5(%arg0: i32) -> (i32, i32) {
    %c0_i32 = arith.constant 0 : i32
    %c0_i32_0 = arith.constant 0 : i32
    %c0_i32_1 = arith.constant 0 : i32
    return %c0_i32, %c0_i32_0 : i32, i32
  }
  func.func @transform_6(%arg0: i32) -> (i32, i32) {
    %c0_i32 = arith.constant 0 : i32
    %c0_i32_0 = arith.constant 0 : i32
    %c0_i32_1 = arith.constant 0 : i32
    return %c0_i32, %c0_i32_0 : i32, i32
  }
  func.func @transform_7(%arg0: i32) -> (i32, i32) {
    %c0_i32 = arith.constant 0 : i32
    %c0_i32_0 = arith.constant 0 : i32
    %c0_i32_1 = arith.constant 0 : i32
    return %c0_i32, %c0_i32_0 : i32, i32
  }
  func.func @transform_8(%arg0: i32) -> (i32, i32) {
    %c0_i32 = arith.constant 0 : i32
    %c0_i32_0 = arith.constant 0 : i32
    %c0_i32_1 = arith.constant 0 : i32
    return %c0_i32, %c0_i32_0 : i32, i32
  }
  func.func @transform_9(%arg0: i32) -> (i32, i32) {
    %c0_i32 = arith.constant 0 : i32
    %c0_i32_0 = arith.constant 0 : i32
    %c0_i32_1 = arith.constant 0 : i32
    return %c0_i32, %c0_i32_0 : i32, i32
  }
  func.func @transform_10(%arg0: i32) -> (i32, i32) {
    %c0_i32 = arith.constant 0 : i32
    %c0_i32_0 = arith.constant 0 : i32
    %c0_i32_1 = arith.constant 0 : i32
    return %c0_i32, %c0_i32_0 : i32, i32
  }
  func.func @transform_11(%arg0: i32) -> (i32, i32) {
    %c0_i32 = arith.constant 0 : i32
    %c0_i32_0 = arith.constant 0 : i32
    %c0_i32_1 = arith.constant 0 : i32
    return %c0_i32, %c0_i32_0 : i32, i32
  }
  func.func @transform_12(%arg0: i32) -> (i32, i32) {
    %c0_i32 = arith.constant 0 : i32
    %c0_i32_0 = arith.constant 0 : i32
    %c0_i32_1 = arith.constant 0 : i32
    return %c0_i32, %c0_i32_0 : i32, i32
  }
  func.func @transform_13(%arg0: i32) -> (i32, i32, i32) {
    %c0_i32 = arith.constant 0 : i32
    %c0_i32_0 = arith.constant 0 : i32
    %c0_i32_1 = arith.constant 0 : i32
    return %arg0, %c0_i32, %c0_i32_0 : i32, i32, i32
  }
}

</mosaic_0001>

<bundles_post_ra>
// kernel: tpu_custom_call.1
= control target key start
LH: loop header
LB: loop body
LE: loop exit
PB: predicated region body
PF: predicated region fallthrough
CT: control target
= control target key end

     0   :  { %s2238_s25 = smov 0   ;;  %s2604_s0 = inlined_call_operand.vmem [shape: f32[2,256,16], index: 0, kind: input, shape index: {}]   ;;  %s2605_s1 = inlined_call_operand.vmem [shape: f32[2,64,32], index: 1, kind: input, shape index: {}]   ;;  %s2606_s2 = inlined_call_operand.vmem [shape: f32[16,256], index: 2, kind: input, shape index: {}]   ;;  %s2607_s3 = inlined_call_operand.vmem [shape: f32[16,16], index: 3, kind: input, shape index: {}]   ;;  %s2608_s4 = inlined_call_operand.vmem [shape: f32[1,16], index: 4, kind: input, shape index: {}]   ;;  %s2609_s5 = inlined_call_operand.vmem [shape: f32[1,16], index: 5, kind: input, shape index: {}]   ;;  %s2610_s6 = inlined_call_operand.vmem [shape: f32[1,16], index: 6, kind: input, shape index: {}]   ;;  %s2611_s7 = inlined_call_operand.vmem [shape: f32[32,32], index: 7, kind: input, shape index: {}]   ;;  %s2612_s8 = inlined_call_operand.vmem [shape: f32[16,64], index: 8, kind: input, shape index: {}]   ;;  %s2613_s9 = inlined_call_operand.vmem [shape: f32[32,32], index: 9, kind: input, shape index: {}]   ;;  %s2614_s10 = inlined_call_operand.vmem [shape: f32[1,32], index: 10, kind: input, shape index: {}]   ;;  %s2615_s11 = inlined_call_operand.vmem [shape: f32[64,32], index: 11, kind: input, shape index: {}]   ;;  %s2616_s12 = inlined_call_operand.vmem [shape: f32[64,64], index: 12, kind: input, shape index: {}]   ;;  %s2617_s13 = inlined_call_operand.vmem [shape: f32[2,64,32], index: 13, kind: output, shape index: {}]  }
   0x1 LB: > { %s1776_s26 = sadd.s32 4294967295, %s2164_s25   ;;  %p1780_p0 = scmp.ge.s32.totalorder %s2164_s25, 1  ;;  %s2164_s25 = sphi %s2238_s25, %s23_s25  }
   0x2   : > { %p397_p1 = scmp.lt.s32.totalorder %s2164_s25, 3 }
   0x4   : > { %p398_p2 = pnand %p1780_p0, %p397_p1 }
   0x5   : > { %p446_p3 = scmp.lt.s32.totalorder (!%p398_p2), %s1776_s26, 1  ;;  %s2166_s23 = smov (!%p398_p2), 32  }
   0x6   : > { %401 = sbr.rel (%p398_p2) target bundleno = 2007 (0x7d7), region = 72  ;;  %s2167_s24 = smov (!%p398_p2), 96  }
   0xb   : > { %v502_v0 = vld [vmem:[%s2606_s2 + $0x8] sm:$0xff]  ;;  %s2619_s26 = smov (!%p446_p3, %s1776_s26), 1  ;;  %v501_v33 = vld [vmem:[%s2606_s2] sm:$0xff]  ;;  %v504_v34 = vld [vmem:[%s2606_s2 + $0x18] sm:$0xff]  ;;  %vm589_vm0 = vcmask 130048   ;;  %vm776_vm1 = vcmask 261120  }
   0xc   : > { %569 = vmatprep.mubr.f32.mxu0 %v502_v0  ;;  %s1845_s29 = sshll.u32 %s2619_s26, 8  ;;  %v503_v35 = vld [vmem:[%s2606_s2 + $0x10] sm:$0xff]  ;;  %v581_v36 = vld [vmem:[%s2607_s3 + $0x8] sm:$0xff]  ;;  %v580_v37 = vld [vmem:[%s2607_s3] sm:$0xff]  ;;  %s1846_s17 = sshll.u32 %s2619_s26, 6  ;;  %vm1198_vm4 = vcmask 523264  }
   0xd   : > { %s2255_s15 = scalar_lea.vmem %s2604_s0, %s1845_s29  ;;  %v1787_v45 = vld [vmem:[%s2608_s4] ss:$0 sm:$0xff]  ;;  %v775_v61 = vld [vmem:[%s2611_s7 + $0x18] sm:$0xff]  ;;  %v774_v62 = vld [vmem:[%s2611_s7 + $0x10] sm:$0xff]  ;;  %s455_s20 = scalar_lea.vmem %s2605_s1, %s1846_s17 }
   0xe   : > { %v492_v1 = vld [vmem:[%s2255_s15 + $0xf8] sm:$0xff]  ;;  %v491_v3 = vld [vmem:[%s2255_s15 + $0xf0] sm:$0xff]  ;;  %v490_v5 = vld [vmem:[%s2255_s15 + $0xe8] sm:$0xff]  ;;  %1973 = vmatprep.subr.mxu1 %v775_v61 }
   0xf   : > { %v476_v2 = vld [vmem:[%s2255_s15 + $0x78] sm:$0xff]  ;;  %1848 = vmatprep.subr.mxu0 %v492_v1  ;;  %v475_v4 = vld [vmem:[%s2255_s15 + $0x70] sm:$0xff]  ;;  %v474_v6 = vld [vmem:[%s2255_s15 + $0x68] sm:$0xff]  ;;  %1974 = vmatpush3.msra.mxu1 %v775_v61 }
  0x10   : > { %1849 = vmatpush3.msra.mxu0 %v476_v2  ;;  %v489_v7 = vld [vmem:[%s2255_s15 + $0xe0] sm:$0xff]  ;;  %v488_v9 = vld [vmem:[%s2255_s15 + $0xd8] sm:$0xff]  ;;  %v487_v11 = vld [vmem:[%s2255_s15 + $0xd0] sm:$0xff]  ;;  %1975 = vmatprep.subr.mxu1 %v774_v62 }
  0x11   : > { %1850 = vmatprep.subr.mxu0 %v491_v3  ;;  %v473_v8 = vld [vmem:[%s2255_s15 + $0x60] sm:$0xff]  ;;  %v472_v10 = vld [vmem:[%s2255_s15 + $0x58] sm:$0xff]  ;;  %v471_v12 = vld [vmem:[%s2255_s15 + $0x50] sm:$0xff]  ;;  %1976 = vmatpush3.msra.mxu1 %v774_v62 }
  0x12   : > { %1851 = vmatpush3.msra.mxu0 %v475_v4  ;;  %v486_v13 = vld [vmem:[%s2255_s15 + $0xc8] sm:$0xff]  ;;  %v485_v15 = vld [vmem:[%s2255_s15 + $0xc0] sm:$0xff]  ;;  %v484_v17 = vld [vmem:[%s2255_s15 + $0xb8] sm:$0xff] }
  0x13   : > { %1852 = vmatprep.subr.mxu0 %v490_v5  ;;  %v470_v14 = vld [vmem:[%s2255_s15 + $0x48] sm:$0xff]  ;;  %v469_v16 = vld [vmem:[%s2255_s15 + $0x40] sm:$0xff]  ;;  %v468_v18 = vld [vmem:[%s2255_s15 + $0x38] sm:$0xff] }
  0x14   : > { %1853 = vmatpush3.msra.mxu0 %v474_v6  ;;  %v483_v19 = vld [vmem:[%s2255_s15 + $0xb0] sm:$0xff]  ;;  %v482_v21 = vld [vmem:[%s2255_s15 + $0xa8] sm:$0xff]  ;;  %v481_v23 = vld [vmem:[%s2255_s15 + $0xa0] sm:$0xff] }
  0x15   : > { %1854 = vmatprep.subr.mxu0 %v489_v7  ;;  %v467_v20 = vld [vmem:[%s2255_s15 + $0x30] sm:$0xff]  ;;  %v466_v22 = vld [vmem:[%s2255_s15 + $0x28] sm:$0xff]  ;;  %v465_v24 = vld [vmem:[%s2255_s15 + $0x20] sm:$0xff] }
  0x16   : > { %1855 = vmatpush3.msra.mxu0 %v473_v8  ;;  %v480_v25 = vld [vmem:[%s2255_s15 + $0x98] sm:$0xff]  ;;  %v479_v27 = vld [vmem:[%s2255_s15 + $0x90] sm:$0xff]  ;;  %v478_v29 = vld [vmem:[%s2255_s15 + $0x88] sm:$0xff] }
  0x17   : > { %1856 = vmatprep.subr.mxu0 %v488_v9  ;;  %v464_v26 = vld [vmem:[%s2255_s15 + $0x18] sm:$0xff]  ;;  %v463_v28 = vld [vmem:[%s2255_s15 + $0x10] sm:$0xff]  ;;  %v462_v30 = vld [vmem:[%s2255_s15 + $0x8] sm:$0xff] }
  0x18   : > { %1857 = vmatpush3.msra.mxu0 %v472_v10  ;;  %v477_v31 = vld [vmem:[%s2255_s15 + $0x80] sm:$0xff]  ;;  %v773_v63 = vld [vmem:[%s2611_s7 + $0x8] sm:$0xff]  ;;  %v495_v4 = vld [vmem:[%s455_s20 + $0x10] sm:$0xff] }
  0x19   : > { %1858 = vmatprep.subr.mxu0 %v487_v11  ;;  %v461_v32 = vld [vmem:[%s2255_s15] sm:$0xff]  ;;  %1977 = vmatprep.subr.mxu1 %v773_v63  ;;  %v494_v2 = vld [vmem:[%s455_s20 + $0x8] sm:$0xff]  ;;  %v496_v6 = vld [vmem:[%s455_s20 + $0x18] sm:$0xff] }
  0x1a   : > { %1859 = vmatpush3.msra.mxu0 %v471_v12  ;;  %v493_v0 = vld [vmem:[%s455_s20] sm:$0xff]  ;;  %1978 = vmatpush3.msra.mxu1 %v773_v63  ;;  %v907_v3 = vld [vmem:[%s2612_s8 + $0x8] sm:$0xff]  ;;  %v499_v9 = vld [vmem:[%s455_s20 + $0x30] sm:$0xff] }
  0x1b   : > { %1860 = vmatprep.subr.mxu0 %v486_v13  ;;  %1981 = vmatprep.mubr.msk.f32.mxu1 %vm776_vm1, %v493_v0  ;;  %v772_v1 = vld [vmem:[%s2611_s7] sm:$0xff]  ;;  %v498_v8 = vld [vmem:[%s455_s20 + $0x28] sm:$0xff]  ;;  %v500_v10 = vld [vmem:[%s455_s20 + $0x38] sm:$0xff] }
  0x1c   : > { %1861 = vmatpush3.msra.mxu0 %v470_v14  ;;  %1979 = vmatprep.subr.mxu1 %v772_v1  ;;  %v906_v5 = vld [vmem:[%s2612_s8] sm:$0xff] }
  0x1d   : > { %1862 = vmatprep.subr.mxu0 %v485_v15  ;;  %1980 = vmatpush3.msra.mxu1 %v772_v1  ;;  %v497_v7 = vld [vmem:[%s455_s20 + $0x20] sm:$0xff] }
  0x1e   : > { %1863 = vmatpush3.msra.mxu0 %v469_v16  ;;  %1982 = vmatmul.mubr.msk.f32.vlgmr.msra.gmra.mxu1 %vm776_vm1, %v494_v2 }
  0x1f   : > { %1864 = vmatprep.subr.mxu0 %v484_v17  ;;  %1993 = vmatprep.subr.mxu1 %v907_v3 }
  0x20   : > { %1865 = vmatpush3.msra.mxu0 %v468_v18  ;;  %1994 = vmatpush3.msra.mxu1 %v907_v3  ;;  %v1790_v18 = vld [vmem:[%s2609_s5] ss:$0 sm:$0xff] }
  0x21   : > { %1866 = vmatprep.subr.mxu0 %v483_v19  ;;  %1984 = vmatprep.mubr.msk.f32.mxu1 %vm776_vm1, %v495_v4 }
  0x22   : > { %1867 = vmatpush3.msra.mxu0 %v467_v20  ;;  %1995 = vmatprep.subr.mxu1 %v906_v5  ;;  %v1791_v20 = vld [vmem:[%s2610_s6] ss:$0 sm:$0xff] }
  0x23   : > { %1868 = vmatprep.subr.mxu0 %v482_v21  ;;  %1996 = vmatpush3.msra.mxu1 %v906_v5 }
  0x24   : > { %1869 = vmatpush3.msra.mxu0 %v466_v22  ;;  %1985 = vmatmul.mubr.msk.f32.gmra.mxu1 %vm776_vm1, %v496_v6 }
  0x25   : > { %1870 = vmatprep.subr.mxu0 %v481_v23  ;;  %1987 = vmatprep.mubr.msk.f32.mxu1 %vm776_vm1, %v497_v7 }
  0x26   : > { %1871 = vmatpush3.msra.mxu0 %v465_v24 }
  0x27   : > { %1872 = vmatprep.subr.mxu0 %v480_v25 }
  0x28   : > { %1873 = vmatpush3.msra.mxu0 %v464_v26  ;;  %1988 = vmatmul.mubr.msk.f32.gmra.mxu1 %vm776_vm1, %v498_v8 }
  0x29   : > { %1874 = vmatprep.subr.mxu0 %v479_v27  ;;  %1990 = vmatprep.mubr.msk.f32.mxu1 %vm776_vm1, %v499_v9 }
  0x2a   : > { %1875 = vmatpush3.msra.mxu0 %v463_v28 }
  0x2b   : > { %1876 = vmatprep.subr.mxu0 %v478_v29 }
  0x2c   : > { %1877 = vmatpush3.msra.mxu0 %v462_v30  ;;  %1991 = vmatmul.mubr.msk.f32.gmra.mxu1 %vm776_vm1, %v500_v10 }
  0x2d   : > { %1878 = vmatprep.subr.mxu0 %v477_v31 }
  0x2e   : > { %1879 = vmatpush3.msra.mxu0 %v461_v32 }
  0x2f   : > { %570 = vmatmul.mubr.f32.vlgmr.msra.gmra.mxu0 %v501_v33  ;;  %1966 = vmatprep.subr.mxu0 %v581_v36 }
  0x30   : > { %574 = vmatprep.mubr.f32.mxu0 %v504_v34  ;;  %1967 = vmatpush3.msra.mxu0 %v581_v36 }
  0x31   : > { %1968 = vmatprep.subr.mxu0 %v580_v37 }
  0x32   : > { %1969 = vmatpush3.msra.mxu0 %v580_v37 }
  0x33   : > { %575 = vmatmul.mubr.f32.gmra.mxu0 %v503_v35 }
  0xef   : > { %v1880_v38 = vpop.f32.mrf.mxu0 }
  0xf1   : > { %v1881_v39 = vpop.f32.mrf.mxu0 }
  0xf2   : > { %v1882_v40 = vadd.f32 %v1881_v39, %v1880_v38 }
  0xf3   : > { %v1883_v41 = vpop.f32.mrf.mxu0 }
  0xf4   : > { %1970 = vmatprep.mubr.msk.f32.mxu0 %vm589_vm0, %v1882_v40 }
  0xf5   : > { %v1884_v42 = vpop.f32.mrf.mxu0 }
  0xf6   : > { %v1885_v43 = vadd.f32 %v1884_v42, %v1883_v41 }
  0xf8   : > { %1971 = vmatmul.mubr.msk.f32.vlgmr.msra.gmra.mxu0 %vm589_vm0, %v1885_v43 }
 0x1b8   : > { %v1972_v44 = vpop.f32.mrf.mxu0 }
 0x1b9   : > { %v668_v48 = vadd.f32 %v1972_v44, %v1787_v45 }
 0x1ba   : > { %v662_v46 = vpop.f32.mrf.mxu0 }
 0x1bb   : > { %v663_v47 = vadd.f32 %v1787_v45, %v662_v46  ;;  %v674_v50 = vsel %vm589_vm0, %v668_v48, 0.0 }
 0x1bd   : > { %v671_v49 = vsel %vm589_vm0, %v663_v47, 0.0 }
 0x1be   : > { %672 = vadd.xlane.f32.xlu0 %v671_v49 }
 0x1c2   : > { %675 = vadd.xlane.f32.xlu0 %v674_v50 }
 0x247   : > { %v673_v51 = vpop.xlane.xlu0 %672 }
 0x248   : > { %v678_v52 = vmul.f32 0.0625, %v673_v51 }
 0x24a   : > { %v680_v53 = vsub.f32 %v663_v47, %v678_v52 }
 0x24b   : > { %v676_v54 = vpop.xlane.xlu0 %675 }
 0x24c   : > { %v679_v55 = vmul.f32 0.0625, %v676_v54  ;;  %v682_v56 = vmul.f32 %v680_v53, %v680_v53 }
 0x24e   : > { %v681_v57 = vsub.f32 %v668_v48, %v679_v55  ;;  %v684_v58 = vsel %vm589_vm0, %v682_v56, 0.0 }
 0x24f   : > { %685 = vadd.xlane.f32.xlu1 %v684_v58 }
 0x250   : > { %v683_v59 = vmul.f32 %v681_v57, %v681_v57 }
 0x252   : > { %v687_v60 = vsel %vm589_vm0, %v683_v59, 0.0 }
 0x253   : > { %688 = vadd.xlane.f32.xlu1 %v687_v60 }
 0x2d8   : > { %v686_v11 = vpop.xlane.xlu1 %685 }
 0x2d9   : > { %v690_v12 = vmul.f32 0.0625, %v686_v11 }
 0x2db   : > { %v692_v13 = vadd.f32 1e-05, %v690_v12 }
 0x2dc   : > { %v689_v14 = vpop.xlane.xlu1 %688 }
 0x2dd   : > { %2114 = vrsqrt.f32 %v692_v13  ;;  %v691_v15 = vmul.f32 0.0625, %v689_v14 }
 0x2df   : > { %v693_v16 = vadd.f32 1e-05, %v691_v15  ;;  %v1983_v15 = vpop.f32.mrf.mxu1 }
 0x2e1   : > { %2116 = vrsqrt.f32 %v693_v16  ;;  %v867_v16 = vpop.f32.mrf.mxu1 }
 0x2ea   : > { %v2115_v17 = vpop.eup %2114 }
 0x2eb   : > { %v696_v19 = vmul.f32 %v2115_v17, %v680_v53  ;;  %v1986_v17 = vpop.f32.mrf.mxu1 }
 0x2ed   : > { %v705_v21 = vmul.f32 %v1790_v18, %v696_v19 }
 0x2ee   : > { %v2117_v22 = vpop.eup %2116 }
 0x2ef   : > { %v697_v23 = vmul.f32 %v2117_v22, %v681_v57  ;;  %v714_v24 = vadd.f32 %v1791_v20, %v705_v21 }
 0x2f1   : > { %v706_v25 = vmul.f32 %v1790_v18, %v697_v23  ;;  %v718_v26 = vmul.f32 0.70710677, %v714_v24  ;;  %v716_v7 = vmul.f32 0.5, %v714_v24  ;;  %v877_v18 = vpop.f32.mrf.mxu1  ;;  %v2361_v23 = vld [vmem:[%s2615_s11 + $0x38] sm:$0xff] }
 0x2f3   : > { %v715_v27 = vadd.f32 %v1791_v20, %v706_v25  ;;  %vm720_vm2 = vcmp.ge.f32.partialorder %v718_v26, 0.0  ;;  %v722_v28 = vsub.f32 0.0, %v718_v26  ;;  %v1989_v19 = vpop.f32.mrf.mxu1  ;;  %v2368_v25 = vld [vmem:[%s2615_s11 + $0x30] sm:$0xff] }
 0x2f5   : > { %v719_v29 = vmul.f32 0.70710677, %v715_v27  ;;  %v724_v30 = vsel %vm720_vm2, %v718_v26, %v722_v28  ;;  %v717_v12 = vmul.f32 0.5, %v715_v27  ;;  %v887_v20 = vpop.f32.mrf.mxu1 }
 0x2f6   : > { %v726_v31 = vmul.f32 0.3275911, %v724_v30  ;;  %v752_v37 = vsub.f32 0.0, %v724_v30 }
 0x2f7   : > { %vm721_vm3 = vcmp.ge.f32.partialorder %v719_v29, 0.0  ;;  %v723_v32 = vsub.f32 0.0, %v719_v29  ;;  %v1992_v21 = vpop.f32.mrf.mxu1 }
 0x2f8   : > { %v728_v33 = vadd.f32 1.0, %v726_v31  ;;  %v754_v39 = vmul.f32 %v752_v37, %v724_v30  ;;  %v2390_v31 = vld [vmem:[%s2615_s11 + $0x20] sm:$0xff]  ;;  %v2417_v37 = vld [vmem:[%s2615_s11 + $0x8] sm:$0xff] }
 0x2f9   : > { %v725_v34 = vsel %vm721_vm3, %v719_v29, %v723_v32  ;;  %v897_v22 = vpop.f32.mrf.mxu1  ;;  %v2381_v29 = vld [vmem:[%s2615_s11 + $0x28] sm:$0xff] }
 0x2fa   : > { %v727_v35 = vmul.f32 0.3275911, %v725_v34  ;;  %2118 = vrcp.f32 %v728_v33  ;;  %v753_v38 = vsub.f32 0.0, %v725_v34  ;;  %v756_v43 = vmul.f32 1.442695, %v754_v39  ;;  %v2399_v33 = vld [vmem:[%s2615_s11 + $0x18] sm:$0xff] }
 0x2fb   : > { %v2426_v39 = vld [vmem:[%s2615_s11] sm:$0xff] }
 0x2fc   : > { %v729_v36 = vadd.f32 1.0, %v727_v35  ;;  %v755_v42 = vmul.f32 %v753_v38, %v725_v34  ;;  %v2408_v35 = vld [vmem:[%s2615_s11 + $0x10] sm:$0xff] }
 0x2fe   : > { %2120 = vrcp.f32 %v729_v36  ;;  %v758_v47 = vmul.f32 1.442695, %v755_v42 }
 0x2ff   : > { %2122 = vpow2.f32 %v756_v43 }
 0x300   : > { %2124 = vpow2.f32 %v758_v47 }
 0x307   : > { %v2119_v40 = vpop.eup %2118 }
 0x308   : > { %v734_v41 = vmul.f32 1.0614054, %v2119_v40 }
 0x30a   : > { %v736_v44 = vadd.f32 -1.4531521, %v734_v41 }
 0x30b   : > { %v2121_v45 = vpop.eup %2120 }
 0x30c   : > { %v738_v46 = vmul.f32 %v2119_v40, %v736_v44  ;;  %v735_v48 = vmul.f32 1.0614054, %v2121_v45  ;;  %v2123_v61 = vpop.eup %2122 }
 0x30d   : > { %v2125_v2 = vpop.eup %2124 }
 0x30e   : > { %v740_v49 = vadd.f32 1.4214138, %v738_v46  ;;  %v737_v50 = vadd.f32 -1.4531521, %v735_v48 }
 0x310   : > { %v742_v51 = vmul.f32 %v2119_v40, %v740_v49  ;;  %v739_v52 = vmul.f32 %v2121_v45, %v737_v50 }
 0x312   : > { %v744_v53 = vadd.f32 -0.28449672, %v742_v51  ;;  %v741_v54 = vadd.f32 1.4214138, %v739_v52 }
 0x314   : > { %v746_v55 = vmul.f32 %v2119_v40, %v744_v53  ;;  %v743_v56 = vmul.f32 %v2121_v45, %v741_v54 }
 0x316   : > { %v748_v57 = vadd.f32 0.2548296, %v746_v55  ;;  %v745_v58 = vadd.f32 -0.28449672, %v743_v56 }
 0x318   : > { %v750_v59 = vmul.f32 %v2119_v40, %v748_v57  ;;  %v747_v60 = vmul.f32 %v2121_v45, %v745_v58  ;;  %v1254_v57 = vld [vmem:[%s2616_s12 + $0x38] sm:$0xff]  ;;  %v1253_v58 = vld [vmem:[%s2616_s12 + $0x30] sm:$0xff] }
 0x319   : > { %2028 = vmatprep.subr.mxu0 %v1254_v57 }
 0x31a   : > { %v760_v62 = vmul.f32 %v2123_v61, %v750_v59  ;;  %v749_v63 = vadd.f32 0.2548296, %v747_v60  ;;  %2029 = vmatpush3.msra.mxu0 %v1254_v57  ;;  %v1252_v59 = vld [vmem:[%s2616_s12 + $0x28] sm:$0xff]  ;;  %v1251_v60 = vld [vmem:[%s2616_s12 + $0x20] sm:$0xff]  ;;  %v1250_v61 = vld [vmem:[%s2616_s12 + $0x18] sm:$0xff] }
 0x31b   : > { %2030 = vmatprep.subr.mxu0 %v1253_v58 }
 0x31c   : > { %v762_v0 = vsub.f32 1.0, %v760_v62  ;;  %v751_v1 = vmul.f32 %v2121_v45, %v749_v63  ;;  %2031 = vmatpush3.msra.mxu0 %v1253_v58  ;;  %v1249_v62 = vld [vmem:[%s2616_s12 + $0x10] sm:$0xff]  ;;  %v1248_v63 = vld [vmem:[%s2616_s12 + $0x8] sm:$0xff] }
 0x31d   : > { %2032 = vmatprep.subr.mxu0 %v1252_v59 }
 0x31e   : > { %v764_v3 = vsub.f32 0.0, %v762_v0  ;;  %v761_v4 = vmul.f32 %v2125_v2, %v751_v1  ;;  %2033 = vmatpush3.msra.mxu0 %v1252_v59 }
 0x31f   : > { %2034 = vmatprep.subr.mxu0 %v1251_v60 }
 0x320   : > { %v766_v5 = vsel %vm720_vm2, %v762_v0, %v764_v3  ;;  %v763_v6 = vsub.f32 1.0, %v761_v4  ;;  %2035 = vmatpush3.msra.mxu0 %v1251_v60  ;;  %v1247_v0 = vld [vmem:[%s2616_s12] sm:$0xff] }
 0x321   : > { %v768_v8 = vadd.f32 1.0, %v766_v5  ;;  %2036 = vmatprep.subr.mxu0 %v1250_v61 }
 0x322   : > { %v765_v9 = vsub.f32 0.0, %v763_v6  ;;  %2037 = vmatpush3.msra.mxu0 %v1250_v61 }
 0x323   : > { %v770_v10 = vmul.f32 %v768_v8, %v716_v7  ;;  %2038 = vmatprep.subr.mxu0 %v1249_v62 }
 0x324   : > { %v767_v11 = vsel %vm721_vm3, %v763_v6, %v765_v9  ;;  %2039 = vmatpush3.msra.mxu0 %v1249_v62 }
 0x325   : > { %1997 = vmatprep.mubr.msk.f32.mxu1 %vm589_vm0, %v770_v10  ;;  %v769_v13 = vadd.f32 1.0, %v767_v11  ;;  %2040 = vmatprep.subr.mxu0 %v1248_v63 }
 0x326   : > { %2041 = vmatpush3.msra.mxu0 %v1248_v63 }
 0x327   : > { %v771_v14 = vmul.f32 %v769_v13, %v717_v12  ;;  %2042 = vmatprep.subr.mxu0 %v1247_v0 }
 0x328   : > { %2043 = vmatpush3.msra.mxu0 %v1247_v0 }
 0x329   : > { %1998 = vmatmul.mubr.msk.f32.vlgmr.msra.gmra.mxu1 %vm589_vm0, %v771_v14 }
 0x32a   : > { %2016 = vmatprep.mubr.msk.f32.mxu1 %vm776_vm1, %v867_v16 }
 0x3e9   : > { %v2363_v24 = vpop.f32.mrf.mxu1 }
 0x3ea   : > { %v1004_v26 = vmul.f32 %v2363_v24, %v2361_v23  ;;  %v1002_v30 = vmul.f32 %v2363_v24, %v2381_v29  ;;  %v1000_v34 = vmul.f32 %v2363_v24, %v2399_v33  ;;  %v998_v38 = vmul.f32 %v2363_v24, %v2417_v37 }
 0x3eb   : > { %v2372_v27 = vpop.f32.mrf.mxu1 }
 0x3ec   : > { %2000 = vmatprep.subr.msk.mxu1 %vm776_vm1, %v1004_v26  ;;  %v1003_v28 = vmul.f32 %v2368_v25, %v2372_v27  ;;  %v1001_v32 = vmul.f32 %v2390_v31, %v2372_v27  ;;  %v999_v36 = vmul.f32 %v2408_v35, %v2372_v27  ;;  %v997_v40 = vmul.f32 %v2426_v39, %v2372_v27 }
 0x3ed   : > { %2001 = vmatpush3.xpose.msk.msra.mxu1 %vm776_vm1, %v1004_v26 }
 0x3ee   : > { %2002 = vmatprep.subr.msk.mxu1 %vm776_vm1, %v1003_v28 }
 0x3f1   : > { %2003 = vmatpush3.xpose.msk.msra.mxu1 %vm776_vm1, %v1003_v28 }
 0x3f2   : > { %2004 = vmatprep.subr.msk.mxu1 %vm776_vm1, %v1002_v30 }
 0x3f5   : > { %2005 = vmatpush3.xpose.msk.msra.mxu1 %vm776_vm1, %v1002_v30 }
 0x3f6   : > { %2006 = vmatprep.subr.msk.mxu1 %vm776_vm1, %v1001_v32 }
 0x3f9   : > { %2007 = vmatpush3.xpose.msk.msra.mxu1 %vm776_vm1, %v1001_v32 }
 0x3fa   : > { %2008 = vmatprep.subr.msk.mxu1 %vm776_vm1, %v1000_v34 }
 0x3fd   : > { %2009 = vmatpush3.xpose.msk.msra.mxu1 %vm776_vm1, %v1000_v34 }
 0x3fe   : > { %2010 = vmatprep.subr.msk.mxu1 %vm776_vm1, %v999_v36 }
 0x401   : > { %2011 = vmatpush3.xpose.msk.msra.mxu1 %vm776_vm1, %v999_v36 }
 0x402   : > { %2012 = vmatprep.subr.msk.mxu1 %vm776_vm1, %v998_v38 }
 0x405   : > { %2013 = vmatpush3.xpose.msk.msra.mxu1 %vm776_vm1, %v998_v38 }
 0x406   : > { %2014 = vmatprep.subr.msk.mxu1 %vm776_vm1, %v997_v40 }
 0x409   : > { %2015 = vmatpush3.xpose.msk.msra.mxu1 %vm776_vm1, %v997_v40 }
 0x40c   : > { %2017 = vmatmul.mubr.msk.f32.vlgmr.msra.gmra.mxu1 %vm776_vm1, %v1983_v15 }
 0x40d   : > { %2019 = vmatprep.mubr.msk.f32.mxu1 %vm776_vm1, %v877_v18 }
 0x410   : > { %2020 = vmatmul.mubr.msk.f32.gmra.mxu1 %vm776_vm1, %v1986_v17 }
 0x411   : > { %2022 = vmatprep.mubr.msk.f32.mxu1 %vm776_vm1, %v887_v20 }
 0x414   : > { %2023 = vmatmul.mubr.msk.f32.gmra.mxu1 %vm776_vm1, %v1989_v19 }
 0x415   : > { %2025 = vmatprep.mubr.msk.f32.mxu1 %vm776_vm1, %v897_v22 }
 0x418   : > { %2026 = vmatmul.mubr.msk.f32.gmra.mxu1 %vm776_vm1, %v1992_v21 }
 0x4cc   : > { %v2018_v41 = vpop.f32.mrf.mxu1 }
 0x4cd   : > { %v1202_v42 = vsel %vm1198_vm4, %v2018_v41, -inf }
 0x4ce   : > { %1203 = vmax.xlane.f32.xlu1 %v1202_v42  ;;  %v1159_v43 = vpop.f32.mrf.mxu1 }
 0x4cf   : > { %v1199_v44 = vsel %vm1198_vm4, %v1159_v43, -inf }
 0x4d0   : > { %1200 = vmax.xlane.f32.xlu0 %v1199_v44  ;;  %v2443_v45 = vpop.f32.mrf.mxu1 }
 0x4d1   : > { %v1208_v46 = vsel %vm1198_vm4, %v2443_v45, -inf }
 0x4d2   : > { %1209 = vmax.xlane.f32.xlu1 %v1208_v46  ;;  %v1169_v47 = vpop.f32.mrf.mxu1 }
 0x4d3   : > { %v1205_v48 = vsel %vm1198_vm4, %v1169_v47, -inf }
 0x4d4   : > { %1206 = vmax.xlane.f32.xlu0 %v1205_v48  ;;  %v2448_v49 = vpop.f32.mrf.mxu1 }
 0x4d5   : > { %v1214_v50 = vsel %vm1198_vm4, %v2448_v49, -inf }
 0x4d6   : > { %1215 = vmax.xlane.f32.xlu1 %v1214_v50  ;;  %v2452_v51 = vpop.f32.mrf.mxu1 }
 0x4d7   : > { %v1211_v52 = vsel %vm1198_vm4, %v2452_v51, -inf }
 0x4d8   : > { %1212 = vmax.xlane.f32.xlu0 %v1211_v52  ;;  %v2456_v53 = vpop.f32.mrf.mxu1  ;;  %v1561_v52 = vld [vmem:[%s2613_s9] sm:$0xff] }
 0x4d9   : > { %v1220_v54 = vsel %vm1198_vm4, %v2456_v53, -inf }
 0x4da   : > { %1221 = vmax.xlane.f32.xlu1 %v1220_v54  ;;  %v2460_v55 = vpop.f32.mrf.mxu1 }
 0x4db   : > { %v1217_v56 = vsel %vm1198_vm4, %v2460_v55, -inf }
 0x4dc   : > { %1218 = vmax.xlane.f32.xlu0 %v1217_v56 }
 0x4eb   : > { %1025 = vrot.lane.b32.xlu1 %v2368_v25, %s2166_s23 }
 0x4ef   : > { %1023 = vrot.lane.b32.xlu1 %v2381_v29, %s2166_s23 }
 0x4f2   : > { %1027 = vrot.lane.b32.xlu0 %v2361_v23, %s2166_s23 }
 0x4f3   : > { %1021 = vrot.lane.b32.xlu1 %v2390_v31, %s2166_s23 }
 0x4f6   : > { %1019 = vrot.lane.b32.xlu0 %v2399_v33, %s2166_s23 }
 0x4f7   : > { %1017 = vrot.lane.b32.xlu1 %v2408_v35, %s2166_s23 }
 0x4fa   : > { %1015 = vrot.lane.b32.xlu0 %v2417_v37, %s2166_s23 }
 0x4fb   : > { %1013 = vrot.lane.b32.xlu1 %v2426_v39, %s2166_s23  ;;  %s460_s23 = scalar_lea.vmem %s2617_s13, %s1846_s17 }
 0x557   : > { %v1204_v1 = vpop.xlane.xlu1 %1203 }
 0x558   : > { %v1224_v2 = vsub.f32 %v2018_v41, %v1204_v1 }
 0x559   : > { %v1201_v3 = vpop.xlane.xlu0 %1200 }
 0x55a   : > { %v1223_v4 = vsub.f32 %v1159_v43, %v1201_v3  ;;  %v1233_v5 = vmul.f32 1.442695, %v1224_v2 }
 0x55b   : > { %v1210_v6 = vpop.xlane.xlu1 %1209 }
 0x55c   : > { %v1231_v7 = vmul.f32 1.442695, %v1223_v4  ;;  %v1226_v8 = vsub.f32 %v2443_v45, %v1210_v6 }
 0x55d   : > { %v1207_v9 = vpop.xlane.xlu0 %1206 }
 0x55e   : > { %2126 = vpow2.f32 %v1231_v7  ;;  %v1225_v10 = vsub.f32 %v1169_v47, %v1207_v9  ;;  %v1237_v11 = vmul.f32 1.442695, %v1226_v8 }
 0x55f   : > { %2128 = vpow2.f32 %v1233_v5  ;;  %v1216_v12 = vpop.xlane.xlu1 %1215 }
 0x560   : > { %v1235_v13 = vmul.f32 1.442695, %v1225_v10  ;;  %v1228_v14 = vsub.f32 %v2448_v49, %v1216_v12 }
 0x561   : > { %v1213_v15 = vpop.xlane.xlu0 %1212 }
 0x562   : > { %2130 = vpow2.f32 %v1235_v13  ;;  %v1227_v16 = vsub.f32 %v2452_v51, %v1213_v15  ;;  %v1241_v17 = vmul.f32 1.442695, %v1228_v14  ;;  %v1563_v51 = vld [vmem:[%s2613_s9 + $0x10] sm:$0xff] }
 0x563   : > { %2132 = vpow2.f32 %v1237_v11  ;;  %v1222_v18 = vpop.xlane.xlu1 %1221 }
 0x564   : > { %v1239_v19 = vmul.f32 1.442695, %v1227_v16  ;;  %v1230_v20 = vsub.f32 %v2456_v53, %v1222_v18 }
 0x565   : > { %v1219_v21 = vpop.xlane.xlu0 %1218 }
 0x566   : > { %2134 = vpow2.f32 %v1239_v19  ;;  %v1229_v22 = vsub.f32 %v2460_v55, %v1219_v21  ;;  %v1245_v23 = vmul.f32 1.442695, %v1230_v20 }
 0x567   : > { %2136 = vpow2.f32 %v1241_v17  ;;  %v1026_v25 = vpop.permute.xlu1 %1025 }
 0x568   : > { %v1243_v26 = vmul.f32 1.442695, %v1229_v22  ;;  %v1043_v28 = vmul.f32 %v1026_v25, %v2372_v27 }
 0x569   : > { %v1028_v29 = vpop.permute.xlu0 %1027 }
 0x56a   : > { %2138 = vpow2.f32 %v1243_v26  ;;  %v1044_v30 = vmul.f32 %v2363_v24, %v1028_v29  ;;  %1420 = vrot.lane.b32.xlu1 %v1043_v28, %s2167_s24 }
 0x56b   : > { %v2504_v31 = vpop.eup %2126  ;;  %2140 = vpow2.f32 %v1245_v23  ;;  %v1024_v32 = vpop.permute.xlu1 %1023 }
 0x56c   : > { %v2506_v33 = vpop.eup %2128  ;;  %2044 = vmatprep.mubr.msk.f32.mxu0 %vm1198_vm4, %v2504_v31  ;;  %1422 = vrot.lane.b32.xlu0 %v1044_v30, %s2167_s24  ;;  %v1042_v35 = vmul.f32 %v2363_v24, %v1024_v32 }
 0x56d   : > { %2045 = vmatmul.mubr.msk.f32.vlgmr.msra.gmra.mxu0 %vm1198_vm4, %v2506_v33  ;;  %v1020_v34 = vpop.permute.xlu0 %1019 }
 0x56e   : > { %v1040_v40 = vmul.f32 %v2363_v24, %v1020_v34 }
 0x56f   : > { %v2514_v36 = vpop.eup %2130  ;;  %v1022_v37 = vpop.permute.xlu1 %1021 }
 0x570   : > { %v2516_v38 = vpop.eup %2132  ;;  %v1041_v39 = vmul.f32 %v1022_v37, %v2372_v27  ;;  %2047 = vmatprep.mubr.msk.f32.mxu0 %vm1198_vm4, %v2514_v36  ;;  %1418 = vrot.lane.b32.xlu0 %v1042_v35, %s2167_s24 }
 0x571   : > { %2048 = vmatmul.mubr.msk.f32.gmra.mxu0 %vm1198_vm4, %v2516_v38  ;;  %v1016_v42 = vpop.permute.xlu0 %1015 }
 0x572   : > { %1416 = vrot.lane.b32.xlu1 %v1041_v39, %s2167_s24  ;;  %v1038_v46 = vmul.f32 %v2363_v24, %v1016_v42  ;;  %v1564_v24 = vld [vmem:[%s2613_s9 + $0x18] sm:$0xff] }
 0x573   : > { %v2526_v41 = vpop.eup %2134  ;;  %v1018_v43 = vpop.permute.xlu1 %1017  ;;  %2084 = vmatprep.subr.mxu1 %v1564_v24 }
 0x574   : > { %v2528_v44 = vpop.eup %2136  ;;  %v1039_v45 = vmul.f32 %v1018_v43, %v2372_v27  ;;  %2050 = vmatprep.mubr.msk.f32.mxu0 %vm1198_vm4, %v2526_v41  ;;  %1414 = vrot.lane.b32.xlu0 %v1040_v40, %s2167_s24 }
 0x575   : > { %2051 = vmatmul.mubr.msk.f32.gmra.mxu0 %vm1198_vm4, %v2528_v44  ;;  %2085 = vmatpush3.msra.mxu1 %v1564_v24 }
 0x576   : > { %1412 = vrot.lane.b32.xlu1 %v1039_v45, %s2167_s24  ;;  %2086 = vmatprep.subr.mxu1 %v1563_v51 }
 0x577   : > { %v2538_v47 = vpop.eup %2138  ;;  %v1014_v48 = vpop.permute.xlu1 %1013  ;;  %2087 = vmatpush3.msra.mxu1 %v1563_v51 }
 0x578   : > { %v2540_v49 = vpop.eup %2140  ;;  %v1037_v50 = vmul.f32 %v1014_v48, %v2372_v27  ;;  %2053 = vmatprep.mubr.msk.f32.mxu0 %vm1198_vm4, %v2538_v47  ;;  %1410 = vrot.lane.b32.xlu0 %v1038_v46, %s2167_s24  ;;  %v1562_v27 = vld [vmem:[%s2613_s9 + $0x8] sm:$0xff] }
 0x579   : > { %2054 = vmatmul.mubr.msk.f32.gmra.mxu0 %vm1198_vm4, %v2540_v49  ;;  %2088 = vmatprep.subr.mxu1 %v1562_v27 }
 0x57a   : > { %1408 = vrot.lane.b32.xlu1 %v1037_v50, %s2167_s24  ;;  %2089 = vmatpush3.msra.mxu1 %v1562_v27 }
 0x57b   : > { %2090 = vmatprep.subr.mxu1 %v1561_v52 }
 0x57c   : > { %2091 = vmatpush3.msra.mxu1 %v1561_v52 }
 0x5dc   : > { %v1421_v54 = vpop.permute.xlu1 %1420 }
 0x5de   : > { %v1423_v53 = vpop.permute.xlu0 %1422 }
 0x5df   : > { %2056 = vmatprep.subr.mxu0 %v1423_v53 }
 0x5e0   : > { %2057 = vmatpush3.msra.mxu0 %v1423_v53 }
 0x5e1   : > { %2058 = vmatprep.subr.mxu0 %v1421_v54 }
 0x5e2   : > { %2059 = vmatpush3.msra.mxu0 %v1421_v54  ;;  %v1419_v55 = vpop.permute.xlu0 %1418 }
 0x5e3   : > { %2060 = vmatprep.subr.mxu0 %v1419_v55 }
 0x5e4   : > { %v1417_v56 = vpop.permute.xlu1 %1416  ;;  %2061 = vmatpush3.msra.mxu0 %v1419_v55 }
 0x5e5   : > { %2062 = vmatprep.subr.mxu0 %v1417_v56 }
 0x5e6   : > { %2063 = vmatpush3.msra.mxu0 %v1417_v56  ;;  %v1415_v57 = vpop.permute.xlu0 %1414 }
 0x5e7   : > { %2064 = vmatprep.subr.mxu0 %v1415_v57 }
 0x5e8   : > { %v1413_v58 = vpop.permute.xlu1 %1412  ;;  %2065 = vmatpush3.msra.mxu0 %v1415_v57 }
 0x5e9   : > { %2066 = vmatprep.subr.mxu0 %v1413_v58 }
 0x5ea   : > { %2067 = vmatpush3.msra.mxu0 %v1413_v58  ;;  %v1411_v59 = vpop.permute.xlu0 %1410 }
 0x5eb   : > { %2068 = vmatprep.subr.mxu0 %v1411_v59 }
 0x5ec   : > { %v1409_v60 = vpop.permute.xlu1 %1408  ;;  %2069 = vmatpush3.msra.mxu0 %v1411_v59 }
 0x5ed   : > { %2070 = vmatprep.subr.mxu0 %v1409_v60 }
 0x5ee   : > { %2071 = vmatpush3.msra.mxu0 %v1409_v60 }
 0x62d   : > { %v2046_v61 = vpop.f32.mrf.mxu0 }
 0x62e   : > { %2142 = vrcp.f32 %v2046_v61 }
 0x62f   : > { %v1345_v62 = vpop.f32.mrf.mxu0 }
 0x630   : > { %2144 = vrcp.f32 %v1345_v62 }
 0x631   : > { %v2049_v63 = vpop.f32.mrf.mxu0 }
 0x632   : > { %2146 = vrcp.f32 %v2049_v63 }
 0x633   : > { %v1355_v0 = vpop.f32.mrf.mxu0 }
 0x634   : > { %2148 = vrcp.f32 %v1355_v0 }
 0x635   : > { %v2052_v1 = vpop.f32.mrf.mxu0 }
 0x636   : > { %2150 = vrcp.f32 %v2052_v1 }
 0x637   : > { %v1365_v2 = vpop.f32.mrf.mxu0 }
 0x638   : > { %2152 = vrcp.f32 %v1365_v2 }
 0x639   : > { %v2055_v3 = vpop.f32.mrf.mxu0 }
 0x63a   : > { %2154 = vrcp.f32 %v2055_v3 }
 0x63b   : > { %v1375_v4 = vpop.f32.mrf.mxu0  ;;  %v2143_v5 = vpop.eup %2142 }
 0x63c   : > { %2156 = vrcp.f32 %v1375_v4  ;;  %v1387_v8 = vmul.f32 %v2143_v5, %v2506_v33 }
 0x63d   : > { %v2145_v6 = vpop.eup %2144 }
 0x63e   : > { %v1385_v7 = vmul.f32 %v2145_v6, %v2504_v31  ;;  %v1834_v31 = vld [vmem:[%s2614_s10] ss:$0 sm:$0xff] }
 0x63f   : > { %v2147_v9 = vpop.eup %2146 }
 0x640   : > { %2072 = vmatprep.mubr.msk.f32.mxu0 %vm1198_vm4, %v1385_v7  ;;  %v1391_v12 = vmul.f32 %v2147_v9, %v2516_v38 }
 0x641   : > { %v2149_v10 = vpop.eup %2148  ;;  %2073 = vmatmul.mubr.msk.f32.vlgmr.msra.gmra.mxu0 %vm1198_vm4, %v1387_v8 }
 0x642   : > { %v1389_v11 = vmul.f32 %v2149_v10, %v2514_v36 }
 0x643   : > { %v2151_v13 = vpop.eup %2150 }
 0x644   : > { %2075 = vmatprep.mubr.msk.f32.mxu0 %vm1198_vm4, %v1389_v11  ;;  %v1395_v16 = vmul.f32 %v2151_v13, %v2528_v44 }
 0x645   : > { %v2153_v14 = vpop.eup %2152  ;;  %2076 = vmatmul.mubr.msk.f32.gmra.mxu0 %vm1198_vm4, %v1391_v12 }
 0x646   : > { %v1393_v15 = vmul.f32 %v2153_v14, %v2526_v41 }
 0x647   : > { %v2155_v17 = vpop.eup %2154 }
 0x648   : > { %2078 = vmatprep.mubr.msk.f32.mxu0 %vm1198_vm4, %v1393_v15  ;;  %v1399_v20 = vmul.f32 %v2155_v17, %v2540_v49 }
 0x649   : > { %v2157_v18 = vpop.eup %2156  ;;  %2079 = vmatmul.mubr.msk.f32.gmra.mxu0 %vm1198_vm4, %v1395_v16 }
 0x64a   : > { %v1397_v19 = vmul.f32 %v2157_v18, %v2538_v47 }
 0x64c   : > { %2081 = vmatprep.mubr.msk.f32.mxu0 %vm1198_vm4, %v1397_v19 }
 0x64d   : > { %2082 = vmatmul.mubr.msk.f32.gmra.mxu0 %vm1198_vm4, %v1399_v20 }
 0x701   : > { %v2074_v21 = vpop.f32.mrf.mxu0 }
 0x703   : > { %v1522_v22 = vpop.f32.mrf.mxu0 }
 0x704   : > { %2092 = vmatprep.mubr.msk.f32.mxu1 %vm776_vm1, %v1522_v22 }
 0x705   : > { %v2077_v23 = vpop.f32.mrf.mxu0  ;;  %2093 = vmatmul.mubr.msk.f32.vlgmr.msra.gmra.mxu1 %vm776_vm1, %v2074_v21 }
 0x707   : > { %v1532_v25 = vpop.f32.mrf.mxu0 }
 0x708   : > { %2095 = vmatprep.mubr.msk.f32.mxu1 %vm776_vm1, %v1532_v25 }
 0x709   : > { %v2080_v26 = vpop.f32.mrf.mxu0  ;;  %2096 = vmatmul.mubr.msk.f32.gmra.mxu1 %vm776_vm1, %v2077_v23 }
 0x70b   : > { %v1542_v28 = vpop.f32.mrf.mxu0 }
 0x70c   : > { %2098 = vmatprep.mubr.msk.f32.mxu1 %vm776_vm1, %v1542_v28 }
 0x70d   : > { %v2083_v29 = vpop.f32.mrf.mxu0  ;;  %2099 = vmatmul.mubr.msk.f32.gmra.mxu1 %vm776_vm1, %v2080_v26 }
 0x70f   : > { %v1552_v30 = vpop.f32.mrf.mxu0 }
 0x710   : > { %2101 = vmatprep.mubr.msk.f32.mxu1 %vm776_vm1, %v1552_v30 }
 0x711   : > { %2102 = vmatmul.mubr.msk.f32.gmra.mxu1 %vm776_vm1, %v2083_v29 }
 0x7c5   : > { %v2094_v32 = vpop.f32.mrf.mxu1 }
 0x7c6   : > { %v1668_v33 = vadd.f32 %v2094_v32, %v1834_v31 }
 0x7c7   : > { %v1662_v34 = vpop.f32.mrf.mxu1 }
 0x7c8   : > { %1702 = vst.msk [vmem:[%s460_s23 + $0x8] sm:$0xff] %vm776_vm1, %v1668_v33  ;;  %v1663_v35 = vadd.f32 %v1834_v31, %v1662_v34 }
 0x7c9   : > { %v2097_v36 = vpop.f32.mrf.mxu1 }
 0x7ca   : > { %1701 = vst.msk [vmem:[%s460_s23] sm:$0xff] %vm776_vm1, %v1663_v35  ;;  %v1678_v37 = vadd.f32 %v2097_v36, %v1834_v31 }
 0x7cb   : > { %v1672_v38 = vpop.f32.mrf.mxu1 }
 0x7cc   : > { %1704 = vst.msk [vmem:[%s460_s23 + $0x18] sm:$0xff] %vm776_vm1, %v1678_v37  ;;  %v1673_v39 = vadd.f32 %v1834_v31, %v1672_v38 }
 0x7cd   : > { %v2100_v40 = vpop.f32.mrf.mxu1 }
 0x7ce   : > { %1703 = vst.msk [vmem:[%s460_s23 + $0x10] sm:$0xff] %vm776_vm1, %v1673_v39  ;;  %v1688_v41 = vadd.f32 %v2100_v40, %v1834_v31 }
 0x7cf   : > { %v1682_v42 = vpop.f32.mrf.mxu1 }
 0x7d0   : > { %1706 = vst.msk [vmem:[%s460_s23 + $0x28] sm:$0xff] %vm776_vm1, %v1688_v41  ;;  %v1683_v43 = vadd.f32 %v1834_v31, %v1682_v42 }
 0x7d1   : > { %v2103_v44 = vpop.f32.mrf.mxu1 }
 0x7d2   : > { %1705 = vst.msk [vmem:[%s460_s23 + $0x20] sm:$0xff] %vm776_vm1, %v1683_v43  ;;  %v1698_v45 = vadd.f32 %v2103_v44, %v1834_v31 }
 0x7d3   : > { %v1692_v46 = vpop.f32.mrf.mxu1 }
 0x7d4   : > { %1708 = vst.msk [vmem:[%s460_s23 + $0x38] sm:$0xff] %vm776_vm1, %v1698_v45  ;;  %v1693_v47 = vadd.f32 %v1834_v31, %v1692_v46 }
 0x7d6   : > { %1707 = vst.msk [vmem:[%s460_s23 + $0x30] sm:$0xff] %vm776_vm1, %v1693_v47 }
 0x7d7 PF: > { %s23_s25 = sadd.s32 1, %s2164_s25  }
 0x7d8   : > { %p20_p4 = scmp.ge.s32.totalorder %s23_s25, 4  }
 0x7da   :  { %22 = sbr.rel (!%p20_p4) target bundleno = 1 (0x1), region = 105 }

</bundles_post_ra>
